<compile_context>
chip_gen: v7x
topology: tpu7x:2x2x1
jax: 0.10.0
libtpu: 0.0.40
codegen_flags: <defaults>
</compile_context>

<pallas_src>
import functools

import jax
import jax.numpy as jnp
from jax.experimental import pallas as pl
from jax.experimental.pallas import tpu as pltpu


# ----------------------------------------------------------------------------
# Kernel
# ----------------------------------------------------------------------------
def _residual_block_kernel(x_ref, m_ref, w1_ref, b1_ref, w2_ref, b2_ref, o_ref,
                           *, H, W, B):
    """Fused conv3x3+BN1+ReLU -> conv3x3+BN2 (+dropout id) -> +x -> ReLU.

    x_ref  : [B, Cp, L]   B images; channels on sublanes, L = H*W on lanes
    m_ref  : [9, B*L]     border masks (0/1 f32), one row per 3x3 tap
    w1_ref : [Cp, 9*Cp]   conv1 weights with BN1 scale folded in (bf16)
    b1_ref : [Cp, 1]      BN1 bias (f32)
    w2_ref : [Cp, 9*Cp]   conv2 weights with BN2 scale folded in (bf16)
    b2_ref : [Cp, 1]      BN2 bias (f32)
    o_ref  : [B, Cp, L]   output block (lane-dense, L multiple of 128)
    """
    L = H * W
    BL = B * L

    # Concatenate the B images of this grid step along lanes (128-aligned).
    x = jnp.concatenate([x_ref[b] for b in range(B)], axis=1)       # [Cp, B*L] f32
    masks = m_ref[...]                                              # [9, B*L] f32

    taps = [(ky - 1, kx - 1) for ky in range(3) for kx in range(3)]

    def im2col_bf16(img):
        # PATCH[t*Cp + ci, b*L + h*W + w] = zeropad(img_b)[ci, h+dy(t), w+dx(t)]
        # A single lane-roll over the whole [Cp, B*L] slab is exact because the
        # lanes that would pull data across an image boundary (or wrap around
        # the slab) are exactly the lanes zeroed by the border mask.
        cols = []
        for t, (dy, dx) in enumerate(taps):
            s = dy * W + dx                                         # flat shift
            shifted = img if s == 0 else pltpu.roll(img, shift=(-s) % BL, axis=1)
            cols.append((shifted * masks[t:t + 1, :]).astype(jnp.bfloat16))
        return jnp.concatenate(cols, axis=0)                        # [9*Cp, B*L] bf16

    # ---- conv1 + bn1 (scale folded into w1) + ReLU --------------------------
    p1 = im2col_bf16(x)
    y1 = jnp.dot(w1_ref[...], p1, preferred_element_type=jnp.float32)
    y1 = jnp.maximum(y1 + b1_ref[...], 0.0)                         # [Cp, B*L] f32

    # ---- conv2 + bn2 + dropout(eval: identity) + residual + final ReLU ------
    # TODO(synk): train-mode Dropout(p=0.3) random mask omitted (eval identity).
    p2 = im2col_bf16(y1)
    y2 = jnp.dot(w2_ref[...], p2, preferred_element_type=jnp.float32)
    y2 = jnp.maximum(y2 + b2_ref[...] + x, 0.0)

    for b in range(B):                           # static, 128-aligned lane slices
        o_ref[b] = y2[:, b * L:(b + 1) * L].astype(o_ref.dtype)


# ----------------------------------------------------------------------------
# Host-side parameter folding + wrapper
# ----------------------------------------------------------------------------
def _fold_conv_bn(w_oihw, gamma, beta, mean, var, c_pad, eps=1e-5):
    """Fold inference BatchNorm into the (channel-padded) conv.

    Returns ([c_pad, 9*c_pad] bf16 weights, [c_pad, 1] f32 bias).
    Padded channels get zero weights / zero bias, so they stay identically 0.
    """
    c_out, c_in = w_oihw.shape[0], w_oihw.shape[1]
    w = jnp.zeros((c_pad, c_pad, 3, 3), jnp.float32).at[:c_out, :c_in].set(w_oihw)
    g = jnp.zeros((c_pad,), jnp.float32).at[:c_out].set(gamma)
    b = jnp.zeros((c_pad,), jnp.float32).at[:c_out].set(beta)
    m = jnp.zeros((c_pad,), jnp.float32).at[:c_out].set(mean)
    v = jnp.ones((c_pad,), jnp.float32).at[:c_out].set(var)
    scale = g / jnp.sqrt(v + eps)                                   # [c_pad]
    bias = b - m * scale                                            # [c_pad]
    # OIHW -> [Cout, ky, kx, Cin] -> [Cout, 9*Cin]; column = (ky*3+kx)*Cin + ci
    wf = jnp.transpose(w, (0, 2, 3, 1)).reshape(c_pad, 9 * c_pad) * scale[:, None]
    return wf.astype(jnp.bfloat16), bias[:, None].astype(jnp.float32)


def _border_masks(H, W, B):
    """[9, B*L] f32 0/1 masks for the 9 taps of a padding=1 3x3 conv."""
    pos = jnp.arange(H * W)
    hh, ww = pos // W, pos % W
    rows = []
    for dy in (-1, 0, 1):
        for dx in (-1, 0, 1):
            rows.append((hh + dy >= 0) & (hh + dy < H)
                        & (ww + dx >= 0) & (ww + dx < W))
    m = jnp.stack(rows).astype(jnp.float32)                         # [9, L]
    return jnp.tile(m, (1, B))                                      # [9, B*L]


def residual_block_forward(x_nchw, params, *, images_per_step=4):
    """x_nchw: [N, C, H, W] float32 -> [N, C, H, W] float32 (inference)."""
    N, C, H, W = x_nchw.shape
    L = H * W
    assert L % 128 == 0, "flattened spatial axis must be a multiple of 128"

    c_pad = max(8, -(-C // 8) * 8)               # sublane-aligned channel count

    # Largest B <= images_per_step that divides N (amortizes per-step overhead;
    # keep modest so the register-resident im2col patch does not spill hard).
    B = 1
    for cand in range(min(N, images_per_step), 0, -1):
        if N % cand == 0:
            B = cand
            break
    grid_n = N // B

    x_flat = x_nchw.reshape(N, C, L)             # free reshape, no transpose
    if c_pad != C:
        x_flat = jnp.pad(x_flat, ((0, 0), (0, c_pad - C), (0, 0)))

    w1, b1 = _fold_conv_bn(params["w1"], params["bn1_gamma"], params["bn1_beta"],
                           params["bn1_mean"], params["bn1_var"], c_pad)
    w2, b2 = _fold_conv_bn(params["w2"], params["bn2_gamma"], params["bn2_beta"],
                           params["bn2_mean"], params["bn2_var"], c_pad)
    masks = _border_masks(H, W, B)

    kernel = functools.partial(_residual_block_kernel, H=H, W=W, B=B)
    out_flat = pl.pallas_call(
        kernel,
        out_shape=jax.ShapeDtypeStruct((N, c_pad, L), x_nchw.dtype),
        grid=(grid_n,),
        in_specs=[
            pl.BlockSpec((B, c_pad, L), lambda g: (g, 0, 0)),       # x (B images)
            pl.BlockSpec((9, B * L), lambda g: (0, 0)),             # border masks
            pl.BlockSpec((c_pad, 9 * c_pad), lambda g: (0, 0)),     # w1 (folded bf16)
            pl.BlockSpec((c_pad, 1), lambda g: (0, 0)),             # b1
            pl.BlockSpec((c_pad, 9 * c_pad), lambda g: (0, 0)),     # w2 (folded bf16)
            pl.BlockSpec((c_pad, 1), lambda g: (0, 0)),             # b2
        ],
        out_specs=pl.BlockSpec((B, c_pad, L), lambda g: (g, 0, 0)),
        compiler_params=pltpu.CompilerParams(
            dimension_semantics=("parallel",)),
    )(x_flat, masks, w1, b1, w2, b2)

    return out_flat[:, :C, :].reshape(N, C, H, W)


# ----------------------------------------------------------------------------
# Pure-JAX reference (inference semantics) for validation
# ----------------------------------------------------------------------------
def _reference_forward(x, params, eps=1e-5):
    def conv3x3(v, w):
        return jax.lax.conv_general_dilated(
            v, w, window_strides=(1, 1), padding=((1, 1), (1, 1)),
            dimension_numbers=("NCHW", "OIHW", "NCHW"),
            precision=jax.lax.Precision.HIGHEST)

    def bn(v, g, b, m, s):
        inv = g / jnp.sqrt(s + eps)
        return v * inv[None, :, None, None] + (b - m * inv)[None, :, None, None]

    z = conv3x3(x, params["w1"])
    z = jnp.maximum(bn(z, params["bn1_gamma"], params["bn1_beta"],
                       params["bn1_mean"], params["bn1_var"]), 0.0)
    z = conv3x3(z, params["w2"])
    z = bn(z, params["bn2_gamma"], params["bn2_beta"],
           params["bn2_mean"], params["bn2_var"])
    return jnp.maximum(z + x, 0.0)               # dropout = identity (eval)


# ----------------------------------------------------------------------------
# Main
# ----------------------------------------------------------------------------
if __name__ == "__main__":
    N, C, H, W = 2, 4, 16, 16

    key = jax.random.PRNGKey(0)
    kx, kw1, kw2, kg1, kb1, km1, kv1, kg2, kb2, km2, kv2 = jax.random.split(key, 11)

    x = jax.random.normal(kx, (N, C, H, W), jnp.float32)

    params = {
        # Conv2d(C, C, 3, padding=1, bias=False) weights, OIHW
        "w1": 0.1 * jax.random.normal(kw1, (C, C, 3, 3), jnp.float32),
        "w2": 0.1 * jax.random.normal(kw2, (C, C, 3, 3), jnp.float32),
        # BatchNorm2d(C) affine params + running stats (inference)
        "bn1_gamma": 1.0 + 0.1 * jax.random.normal(kg1, (C,), jnp.float32),
        "bn1_beta": 0.1 * jax.random.normal(kb1, (C,), jnp.float32),
        "bn1_mean": 0.05 * jax.random.normal(km1, (C,), jnp.float32),
        "bn1_var": 1.0 + 0.1 * jnp.abs(jax.random.normal(kv1, (C,), jnp.float32)),
        "bn2_gamma": 1.0 + 0.1 * jax.random.normal(kg2, (C,), jnp.float32),
        "bn2_beta": 0.1 * jax.random.normal(kb2, (C,), jnp.float32),
        "bn2_mean": 0.05 * jax.random.normal(km2, (C,), jnp.float32),
        "bn2_var": 1.0 + 0.1 * jnp.abs(jax.random.normal(kv2, (C,), jnp.float32)),
    }

    out = jax.jit(residual_block_forward)(x, params)
    jax.block_until_ready(out)
    assert out.shape == (N, C, H, W), out.shape

    ref = _reference_forward(x, params)
    err = float(jnp.max(jnp.abs(out - ref)))
    # bf16 MXU operands vs. HIGHEST-precision reference: allow a small gap.
    assert err < 2e-2, f"max abs error vs reference: {err}"

    print("KERNEL_OK")
</pallas_src>

<mosaic_0001>
module attributes {stable_mosaic.version = 11 : i64} {
  func.func @_residual_block_kernel(%arg0: i32, %arg1: memref<2x8x256xf32, #tpu.memory_space<vmem>>, %arg2: memref<9x512xf32, #tpu.memory_space<vmem>>, %arg3: memref<8x72xbf16, #tpu.memory_space<vmem>>, %arg4: memref<8x1xf32, #tpu.memory_space<vmem>>, %arg5: memref<8x72xbf16, #tpu.memory_space<vmem>>, %arg6: memref<8x1xf32, #tpu.memory_space<vmem>>, %arg7: memref<2x8x256xf32, #tpu.memory_space<vmem>>) attributes {dimension_semantics = [#tpu.dimension_semantics<parallel>], iteration_bounds = array<i64: 1>, scalar_prefetch = 0 : i64, scratch_operands = 0 : i64, tpu.core_type = #tpu.core_type<tc>, window_params = [{transform_indices = @transform_0, window_bounds = array<i64: 2, 8, 256>}, {pipeline_mode = #tpu.pipeline_mode<synchronous>, transform_indices = @transform_1, window_bounds = array<i64: 9, 512>}, {pipeline_mode = #tpu.pipeline_mode<synchronous>, transform_indices = @transform_2, window_bounds = array<i64: 8, 72>}, {pipeline_mode = #tpu.pipeline_mode<synchronous>, transform_indices = @transform_3, window_bounds = array<i64: 8, 1>}, {pipeline_mode = #tpu.pipeline_mode<synchronous>, transform_indices = @transform_4, window_bounds = array<i64: 8, 72>}, {pipeline_mode = #tpu.pipeline_mode<synchronous>, transform_indices = @transform_5, window_bounds = array<i64: 8, 1>}, {transform_indices = @transform_6, window_bounds = array<i64: 2, 8, 256>}]} {
    %c0 = arith.constant 0 : index
    %c0_0 = arith.constant 0 : index
    %c0_1 = arith.constant 0 : index
    %0 = vector.load %arg1[%c0, %c0_0, %c0_1] : memref<2x8x256xf32, #tpu.memory_space<vmem>>, vector<1x8x256xf32>
    %1 = vector.shape_cast %0 : vector<1x8x256xf32> to vector<8x256xf32>
    %c1 = arith.constant 1 : index
    %c0_2 = arith.constant 0 : index
    %c0_3 = arith.constant 0 : index
    %2 = vector.load %arg1[%c1, %c0_2, %c0_3] : memref<2x8x256xf32, #tpu.memory_space<vmem>>, vector<1x8x256xf32>
    %3 = vector.shape_cast %2 : vector<1x8x256xf32> to vector<8x256xf32>
    %4 = tpu.concatenate %1, %3 in 1 : vector<8x256xf32>, vector<8x256xf32> -> vector<8x512xf32>
    %c0_4 = arith.constant 0 : index
    %c0_5 = arith.constant 0 : index
    %5 = vector.load %arg2[%c0_4, %c0_5] : memref<9x512xf32, #tpu.memory_space<vmem>>, vector<9x512xf32>
    %c17_i32 = arith.constant 17 : i32
    %6 = tpu.dynamic_rotate %4 by %c17_i32 dim 1 : vector<8x512xf32>, i32 -> vector<8x512xf32>
    %7 = vector.extract_strided_slice %5 {offsets = [0, 0], sizes = [1, 512], strides = [1, 1]} : vector<9x512xf32> to vector<1x512xf32>
    %8 = vector.broadcast %7 : vector<1x512xf32> to vector<8x512xf32>
    %9 = arith.mulf %6, %8 : vector<8x512xf32>
    %10 = arith.truncf %9 : vector<8x512xf32> to vector<8x512xbf16>
    %c16_i32 = arith.constant 16 : i32
    %11 = tpu.dynamic_rotate %4 by %c16_i32 dim 1 : vector<8x512xf32>, i32 -> vector<8x512xf32>
    %12 = vector.extract_strided_slice %5 {offsets = [1, 0], sizes = [1, 512], strides = [1, 1]} : vector<9x512xf32> to vector<1x512xf32>
    %13 = vector.broadcast %12 : vector<1x512xf32> to vector<8x512xf32>
    %14 = arith.mulf %11, %13 : vector<8x512xf32>
    %15 = arith.truncf %14 : vector<8x512xf32> to vector<8x512xbf16>
    %c15_i32 = arith.constant 15 : i32
    %16 = tpu.dynamic_rotate %4 by %c15_i32 dim 1 : vector<8x512xf32>, i32 -> vector<8x512xf32>
    %17 = vector.extract_strided_slice %5 {offsets = [2, 0], sizes = [1, 512], strides = [1, 1]} : vector<9x512xf32> to vector<1x512xf32>
    %18 = vector.broadcast %17 : vector<1x512xf32> to vector<8x512xf32>
    %19 = arith.mulf %16, %18 : vector<8x512xf32>
    %20 = arith.truncf %19 : vector<8x512xf32> to vector<8x512xbf16>
    %c1_i32 = arith.constant 1 : i32
    %21 = tpu.dynamic_rotate %4 by %c1_i32 dim 1 : vector<8x512xf32>, i32 -> vector<8x512xf32>
    %22 = vector.extract_strided_slice %5 {offsets = [3, 0], sizes = [1, 512], strides = [1, 1]} : vector<9x512xf32> to vector<1x512xf32>
    %23 = vector.broadcast %22 : vector<1x512xf32> to vector<8x512xf32>
    %24 = arith.mulf %21, %23 : vector<8x512xf32>
    %25 = arith.truncf %24 : vector<8x512xf32> to vector<8x512xbf16>
    %26 = vector.extract_strided_slice %5 {offsets = [4, 0], sizes = [1, 512], strides = [1, 1]} : vector<9x512xf32> to vector<1x512xf32>
    %27 = vector.broadcast %26 : vector<1x512xf32> to vector<8x512xf32>
    %28 = arith.mulf %4, %27 : vector<8x512xf32>
    %29 = arith.truncf %28 : vector<8x512xf32> to vector<8x512xbf16>
    %c511_i32 = arith.constant 511 : i32
    %30 = tpu.dynamic_rotate %4 by %c511_i32 dim 1 : vector<8x512xf32>, i32 -> vector<8x512xf32>
    %31 = vector.extract_strided_slice %5 {offsets = [5, 0], sizes = [1, 512], strides = [1, 1]} : vector<9x512xf32> to vector<1x512xf32>
    %32 = vector.broadcast %31 : vector<1x512xf32> to vector<8x512xf32>
    %33 = arith.mulf %30, %32 : vector<8x512xf32>
    %34 = arith.truncf %33 : vector<8x512xf32> to vector<8x512xbf16>
    %c497_i32 = arith.constant 497 : i32
    %35 = tpu.dynamic_rotate %4 by %c497_i32 dim 1 : vector<8x512xf32>, i32 -> vector<8x512xf32>
    %36 = vector.extract_strided_slice %5 {offsets = [6, 0], sizes = [1, 512], strides = [1, 1]} : vector<9x512xf32> to vector<1x512xf32>
    %37 = vector.broadcast %36 : vector<1x512xf32> to vector<8x512xf32>
    %38 = arith.mulf %35, %37 : vector<8x512xf32>
    %39 = arith.truncf %38 : vector<8x512xf32> to vector<8x512xbf16>
    %c496_i32 = arith.constant 496 : i32
    %40 = tpu.dynamic_rotate %4 by %c496_i32 dim 1 : vector<8x512xf32>, i32 -> vector<8x512xf32>
    %41 = vector.extract_strided_slice %5 {offsets = [7, 0], sizes = [1, 512], strides = [1, 1]} : vector<9x512xf32> to vector<1x512xf32>
    %42 = vector.broadcast %41 : vector<1x512xf32> to vector<8x512xf32>
    %43 = arith.mulf %40, %42 : vector<8x512xf32>
    %44 = arith.truncf %43 : vector<8x512xf32> to vector<8x512xbf16>
    %c495_i32 = arith.constant 495 : i32
    %45 = tpu.dynamic_rotate %4 by %c495_i32 dim 1 : vector<8x512xf32>, i32 -> vector<8x512xf32>
    %46 = vector.extract_strided_slice %5 {offsets = [8, 0], sizes = [1, 512], strides = [1, 1]} : vector<9x512xf32> to vector<1x512xf32>
    %47 = vector.broadcast %46 : vector<1x512xf32> to vector<8x512xf32>
    %48 = arith.mulf %45, %47 : vector<8x512xf32>
    %49 = arith.truncf %48 : vector<8x512xf32> to vector<8x512xbf16>
    %50 = tpu.concatenate %10, %15, %20, %25, %29, %34, %39, %44, %49 in 0 : vector<8x512xbf16>, vector<8x512xbf16>, vector<8x512xbf16>, vector<8x512xbf16>, vector<8x512xbf16>, vector<8x512xbf16>, vector<8x512xbf16>, vector<8x512xbf16>, vector<8x512xbf16> -> vector<72x512xbf16>
    %c0_6 = arith.constant 0 : index
    %c0_7 = arith.constant 0 : index
    %51 = vector.load %arg3[%c0_6, %c0_7] : memref<8x72xbf16, #tpu.memory_space<vmem>>, vector<8x72xbf16>
    %cst = arith.constant dense<0.000000e+00> : vector<8x512xf32>
    %52 = tpu.matmul %51, %50, %cst {dimension_numbers = #tpu.dot_dimension_numbers<[1], [0], [0], [1], [0, 0, 1, 1], [], []>} : vector<8x72xbf16>, vector<72x512xbf16>, vector<8x512xf32> -> vector<8x512xf32>
    %c0_8 = arith.constant 0 : index
    %c0_9 = arith.constant 0 : index
    %53 = vector.load %arg4[%c0_8, %c0_9] : memref<8x1xf32, #tpu.memory_space<vmem>>, vector<8x1xf32>
    %54 = vector.broadcast %53 : vector<8x1xf32> to vector<8x512xf32>
    %55 = arith.addf %52, %54 : vector<8x512xf32>
    %cst_10 = arith.constant 0.000000e+00 : f32
    %56 = vector.broadcast %cst_10 : f32 to vector<8x512xf32>
    %57 = arith.maximumf %55, %56 : vector<8x512xf32>
    %c17_i32_11 = arith.constant 17 : i32
    %58 = tpu.dynamic_rotate %57 by %c17_i32_11 dim 1 : vector<8x512xf32>, i32 -> vector<8x512xf32>
    %59 = vector.extract_strided_slice %5 {offsets = [0, 0], sizes = [1, 512], strides = [1, 1]} : vector<9x512xf32> to vector<1x512xf32>
    %60 = vector.broadcast %59 : vector<1x512xf32> to vector<8x512xf32>
    %61 = arith.mulf %58, %60 : vector<8x512xf32>
    %62 = arith.truncf %61 : vector<8x512xf32> to vector<8x512xbf16>
    %c16_i32_12 = arith.constant 16 : i32
    %63 = tpu.dynamic_rotate %57 by %c16_i32_12 dim 1 : vector<8x512xf32>, i32 -> vector<8x512xf32>
    %64 = vector.extract_strided_slice %5 {offsets = [1, 0], sizes = [1, 512], strides = [1, 1]} : vector<9x512xf32> to vector<1x512xf32>
    %65 = vector.broadcast %64 : vector<1x512xf32> to vector<8x512xf32>
    %66 = arith.mulf %63, %65 : vector<8x512xf32>
    %67 = arith.truncf %66 : vector<8x512xf32> to vector<8x512xbf16>
    %c15_i32_13 = arith.constant 15 : i32
    %68 = tpu.dynamic_rotate %57 by %c15_i32_13 dim 1 : vector<8x512xf32>, i32 -> vector<8x512xf32>
    %69 = vector.extract_strided_slice %5 {offsets = [2, 0], sizes = [1, 512], strides = [1, 1]} : vector<9x512xf32> to vector<1x512xf32>
    %70 = vector.broadcast %69 : vector<1x512xf32> to vector<8x512xf32>
    %71 = arith.mulf %68, %70 : vector<8x512xf32>
    %72 = arith.truncf %71 : vector<8x512xf32> to vector<8x512xbf16>
    %c1_i32_14 = arith.constant 1 : i32
    %73 = tpu.dynamic_rotate %57 by %c1_i32_14 dim 1 : vector<8x512xf32>, i32 -> vector<8x512xf32>
    %74 = vector.extract_strided_slice %5 {offsets = [3, 0], sizes = [1, 512], strides = [1, 1]} : vector<9x512xf32> to vector<1x512xf32>
    %75 = vector.broadcast %74 : vector<1x512xf32> to vector<8x512xf32>
    %76 = arith.mulf %73, %75 : vector<8x512xf32>
    %77 = arith.truncf %76 : vector<8x512xf32> to vector<8x512xbf16>
    %78 = vector.extract_strided_slice %5 {offsets = [4, 0], sizes = [1, 512], strides = [1, 1]} : vector<9x512xf32> to vector<1x512xf32>
    %79 = vector.broadcast %78 : vector<1x512xf32> to vector<8x512xf32>
    %80 = arith.mulf %57, %79 : vector<8x512xf32>
    %81 = arith.truncf %80 : vector<8x512xf32> to vector<8x512xbf16>
    %c511_i32_15 = arith.constant 511 : i32
    %82 = tpu.dynamic_rotate %57 by %c511_i32_15 dim 1 : vector<8x512xf32>, i32 -> vector<8x512xf32>
    %83 = vector.extract_strided_slice %5 {offsets = [5, 0], sizes = [1, 512], strides = [1, 1]} : vector<9x512xf32> to vector<1x512xf32>
    %84 = vector.broadcast %83 : vector<1x512xf32> to vector<8x512xf32>
    %85 = arith.mulf %82, %84 : vector<8x512xf32>
    %86 = arith.truncf %85 : vector<8x512xf32> to vector<8x512xbf16>
    %c497_i32_16 = arith.constant 497 : i32
    %87 = tpu.dynamic_rotate %57 by %c497_i32_16 dim 1 : vector<8x512xf32>, i32 -> vector<8x512xf32>
    %88 = vector.extract_strided_slice %5 {offsets = [6, 0], sizes = [1, 512], strides = [1, 1]} : vector<9x512xf32> to vector<1x512xf32>
    %89 = vector.broadcast %88 : vector<1x512xf32> to vector<8x512xf32>
    %90 = arith.mulf %87, %89 : vector<8x512xf32>
    %91 = arith.truncf %90 : vector<8x512xf32> to vector<8x512xbf16>
    %c496_i32_17 = arith.constant 496 : i32
    %92 = tpu.dynamic_rotate %57 by %c496_i32_17 dim 1 : vector<8x512xf32>, i32 -> vector<8x512xf32>
    %93 = vector.extract_strided_slice %5 {offsets = [7, 0], sizes = [1, 512], strides = [1, 1]} : vector<9x512xf32> to vector<1x512xf32>
    %94 = vector.broadcast %93 : vector<1x512xf32> to vector<8x512xf32>
    %95 = arith.mulf %92, %94 : vector<8x512xf32>
    %96 = arith.truncf %95 : vector<8x512xf32> to vector<8x512xbf16>
    %c495_i32_18 = arith.constant 495 : i32
    %97 = tpu.dynamic_rotate %57 by %c495_i32_18 dim 1 : vector<8x512xf32>, i32 -> vector<8x512xf32>
    %98 = vector.extract_strided_slice %5 {offsets = [8, 0], sizes = [1, 512], strides = [1, 1]} : vector<9x512xf32> to vector<1x512xf32>
    %99 = vector.broadcast %98 : vector<1x512xf32> to vector<8x512xf32>
    %100 = arith.mulf %97, %99 : vector<8x512xf32>
    %101 = arith.truncf %100 : vector<8x512xf32> to vector<8x512xbf16>
    %102 = tpu.concatenate %62, %67, %72, %77, %81, %86, %91, %96, %101 in 0 : vector<8x512xbf16>, vector<8x512xbf16>, vector<8x512xbf16>, vector<8x512xbf16>, vector<8x512xbf16>, vector<8x512xbf16>, vector<8x512xbf16>, vector<8x512xbf16>, vector<8x512xbf16> -> vector<72x512xbf16>
    %c0_19 = arith.constant 0 : index
    %c0_20 = arith.constant 0 : index
    %103 = vector.load %arg5[%c0_19, %c0_20] : memref<8x72xbf16, #tpu.memory_space<vmem>>, vector<8x72xbf16>
    %cst_21 = arith.constant dense<0.000000e+00> : vector<8x512xf32>
    %104 = tpu.matmul %103, %102, %cst_21 {dimension_numbers = #tpu.dot_dimension_numbers<[1], [0], [0], [1], [0, 0, 1, 1], [], []>} : vector<8x72xbf16>, vector<72x512xbf16>, vector<8x512xf32> -> vector<8x512xf32>
    %c0_22 = arith.constant 0 : index
    %c0_23 = arith.constant 0 : index
    %105 = vector.load %arg6[%c0_22, %c0_23] : memref<8x1xf32, #tpu.memory_space<vmem>>, vector<8x1xf32>
    %106 = vector.broadcast %105 : vector<8x1xf32> to vector<8x512xf32>
    %107 = arith.addf %104, %106 : vector<8x512xf32>
    %108 = arith.addf %107, %4 : vector<8x512xf32>
    %cst_24 = arith.constant 0.000000e+00 : f32
    %109 = vector.broadcast %cst_24 : f32 to vector<8x512xf32>
    %110 = arith.maximumf %108, %109 : vector<8x512xf32>
    %111 = vector.extract_strided_slice %110 {offsets = [0, 0], sizes = [8, 256], strides = [1, 1]} : vector<8x512xf32> to vector<8x256xf32>
    %c0_25 = arith.constant 0 : index
    %c0_26 = arith.constant 0 : index
    %c0_27 = arith.constant 0 : index
    %112 = vector.load %arg7[%c0_25, %c0_26, %c0_27] : memref<2x8x256xf32, #tpu.memory_space<vmem>>, vector<1x8x256xf32>
    %113 = vector.shape_cast %112 : vector<1x8x256xf32> to vector<8x256xf32>
    %114 = vector.shape_cast %111 : vector<8x256xf32> to vector<1x8x256xf32>
    tpu.vector_store %arg7[%c0_25, %c0_26, %c0_27], %114 {strides = array<i32>} : memref<2x8x256xf32, #tpu.memory_space<vmem>>, vector<1x8x256xf32>,
    %115 = vector.extract_strided_slice %110 {offsets = [0, 256], sizes = [8, 256], strides = [1, 1]} : vector<8x512xf32> to vector<8x256xf32>
    %c1_28 = arith.constant 1 : index
    %c0_29 = arith.constant 0 : index
    %c0_30 = arith.constant 0 : index
    %116 = vector.load %arg7[%c1_28, %c0_29, %c0_30] : memref<2x8x256xf32, #tpu.memory_space<vmem>>, vector<1x8x256xf32>
    %117 = vector.shape_cast %116 : vector<1x8x256xf32> to vector<8x256xf32>
    %118 = vector.shape_cast %115 : vector<8x256xf32> to vector<1x8x256xf32>
    tpu.vector_store %arg7[%c1_28, %c0_29, %c0_30], %118 {strides = array<i32>} : memref<2x8x256xf32, #tpu.memory_space<vmem>>, vector<1x8x256xf32>,
    return
  }
  func.func @transform_0(%arg0: i32) -> (i32, i32, i32) {
    %c0_i32 = arith.constant 0 : i32
    %c0_i32_0 = arith.constant 0 : i32
    %c0_i32_1 = arith.constant 0 : i32
    return %arg0, %c0_i32, %c0_i32_0 : i32, i32, i32
  }
  func.func @transform_1(%arg0: i32) -> (i32, i32) {
    %c0_i32 = arith.constant 0 : i32
    %c0_i32_0 = arith.constant 0 : i32
    %c0_i32_1 = arith.constant 0 : i32
    return %c0_i32, %c0_i32_0 : i32, i32
  }
  func.func @transform_2(%arg0: i32) -> (i32, i32) {
    %c0_i32 = arith.constant 0 : i32
    %c0_i32_0 = arith.constant 0 : i32
    %c0_i32_1 = arith.constant 0 : i32
    return %c0_i32, %c0_i32_0 : i32, i32
  }
  func.func @transform_3(%arg0: i32) -> (i32, i32) {
    %c0_i32 = arith.constant 0 : i32
    %c0_i32_0 = arith.constant 0 : i32
    %c0_i32_1 = arith.constant 0 : i32
    return %c0_i32, %c0_i32_0 : i32, i32
  }
  func.func @transform_4(%arg0: i32) -> (i32, i32) {
    %c0_i32 = arith.constant 0 : i32
    %c0_i32_0 = arith.constant 0 : i32
    %c0_i32_1 = arith.constant 0 : i32
    return %c0_i32, %c0_i32_0 : i32, i32
  }
  func.func @transform_5(%arg0: i32) -> (i32, i32) {
    %c0_i32 = arith.constant 0 : i32
    %c0_i32_0 = arith.constant 0 : i32
    %c0_i32_1 = arith.constant 0 : i32
    return %c0_i32, %c0_i32_0 : i32, i32
  }
  func.func @transform_6(%arg0: i32) -> (i32, i32, i32) {
    %c0_i32 = arith.constant 0 : i32
    %c0_i32_0 = arith.constant 0 : i32
    %c0_i32_1 = arith.constant 0 : i32
    return %arg0, %c0_i32, %c0_i32_0 : i32, i32, i32
  }
}

</mosaic_0001>

<bundles_post_ra>
// kernel: residual_block_forward.1
= control target key start
LH: loop header
LB: loop body
LE: loop exit
PB: predicated region body
PF: predicated region fallthrough
CT: control target
= control target key end

     0   :  { %s980_s25 = smov 16   ;;  %s981_s30 = smov 17   ;;  %v987_v4 = vmov 0   ;;  %v45_v6 = vlaneseq  ;;  %vm391_vm2 = vcmask 1043456   ;;  %vm463_vm9 = vcmask 588800   ;;  %s1629_s0 = inlined_call_operand.vmem [shape: f32[2,8,256], index: 0, kind: input, shape index: {}]   ;;  %s1630_s3 = inlined_call_operand.vmem [shape: f32[8,1], index: 3, kind: input, shape index: {}]   ;;  %s1631_s1 = inlined_call_operand.vmem [shape: f32[9,512], index: 1, kind: input, shape index: {}]   ;;  %s1632_s2 = inlined_call_operand.vmem [shape: bf16[8,72], index: 2, kind: input, shape index: {}]   ;;  %s1633_s5 = inlined_call_operand.vmem [shape: f32[8,1], index: 5, kind: input, shape index: {}]   ;;  %s1634_s4 = inlined_call_operand.vmem [shape: bf16[8,72], index: 4, kind: input, shape index: {}]   ;;  %s1635_s6 = inlined_call_operand.vmem [shape: f32[2,8,256], index: 6, kind: output, shape index: {}]  }
   0x1   :  { %v1027_v0 = vld [vmem:[%s1629_s0 + $0x10] sm:$0xff]  ;;  %v1032_v1 = vld [vmem:[%s1629_s0] sm:$0xff]  ;;  %v1041_v2 = vld [vmem:[%s1629_s0 + $0x18] sm:$0xff]  ;;  %s982_s7 = smov 1   ;;  %s983_s8 = smov 15   ;;  %511 = vmatprep.mubr.bf16.mxu0 %v987_v4  ;;  %552 = vmatprep.mubr.bf16.mxu1 %v987_v4 }
   0x2   :  { %80 = vrot.lane.b32.xlu1 %v1027_v0, %s980_s25  ;;  %76 = vrot.lane.b32.xlu0 %v1032_v1, %s980_s25  ;;  %v1046_v3 = vld [vmem:[%s1629_s0 + $0x8] sm:$0xff]  ;;  %s984_s9 = smov 127   ;;  %s985_s10 = smov 112   ;;  %v457_v5 = vld [vmem:[%s1630_s3] sm:$0xff]  ;;  %v1114_v7 = vshrl.u32 %v45_v6, 7  ;;  %v1116_v8 = vand.u32 127, %v45_v6 }
   0x3   :  { %s986_s11 = smov 113   ;;  %975 = vset.pattern.permute.xlu0 %v987_v4  ;;  %s988_s12 = smov 111   ;;  %v1122_v10 = vld [vmem:[%s1631_s1 + $0x8] sm:$0xff]  ;;  %v1127_v13 = vld [vmem:[%s1631_s1] sm:$0xff]  ;;  %v1132_v14 = vld [vmem:[%s1631_s1 + $0x18] sm:$0xff] }
   0x4   :  { %v91_v9 = vsub.s32 1, %v1114_v7  ;;  %v1137_v15 = vld [vmem:[%s1631_s1 + $0x10] sm:$0xff]  ;;  %vm84_vm0 = vcmp.lt.s32.totalorder %v1116_v8, 16  ;;  %v54_v19 = vsub.s32 0, %v1114_v7  ;;  %vm47_vm1 = vcmp.lt.s32.totalorder %v1116_v8, 17 }
   0x5   :  { %v165_v42 = vsub.s32 3, %v1114_v7  ;;  %vm158_vm3 = vcmp.lt.s32.totalorder %v1116_v8, 1  ;;  %vm121_vm4 = vcmp.lt.s32.totalorder %v1116_v8, 15  ;;  %vm219_vm5 = vcmp.lt.s32.totalorder %v1116_v8, 127 }
   0x6   :  { %82 = vrot.lane.b32.xlu1 %v1041_v2, %s980_s25  ;;  %78 = vrot.lane.b32.xlu0 %v1046_v3, %s980_s25  ;;  %v1141_v16 = vrot.slane %v1122_v10, %v91_v9  ;;  %v1144_v17 = vrot.slane %v1127_v13, %v91_v9  ;;  %v1147_v18 = vrot.slane %v1132_v14, %v91_v9  ;;  %vm293_vm6 = vcmp.lt.s32.totalorder %v1116_v8, 112 }
   0x7   :  { %v1151_v21 = vrot.slane %v1137_v15, %v91_v9  ;;  %v1166_v30 = vrot.slane %v1122_v10, %v54_v19  ;;  %v1172_v36 = vrot.slane %v1127_v13, %v54_v19  ;;  %v1175_v37 = vrot.slane %v1137_v15, %v54_v19 }
   0x8   :  { %v1178_v38 = vrot.slane %v1132_v14, %v54_v19  ;;  %v1194_v57 = vrot.slane %v1122_v10, %v165_v42  ;;  %v1203_v19 = vrot.slane %v1127_v13, %v165_v42  ;;  %vm256_vm7 = vcmp.lt.s32.totalorder %v1116_v8, 113 }
   0x9   :  { %vm330_vm8 = vcmp.lt.s32.totalorder %v1116_v8, 111 }
   0xa   :  { %39 = vrot.lane.b32.xlu1 %v1046_v3, %s981_s30  ;;  %37 = vrot.lane.b32.xlu0 %v1032_v1, %s981_s30 }
   0xe   :  { %43 = vrot.lane.b32.xlu1 %v1041_v2, %s981_s30  ;;  %41 = vrot.lane.b32.xlu0 %v1027_v0, %s981_s30 }
  0x12   :  { %152 = vrot.lane.b32.xlu1 %v1046_v3, %s982_s7  ;;  %150 = vrot.lane.b32.xlu0 %v1032_v1, %s982_s7 }
  0x16   :  { %156 = vrot.lane.b32.xlu1 %v1041_v2, %s982_s7  ;;  %154 = vrot.lane.b32.xlu0 %v1027_v0, %s982_s7 }
  0x1a   :  { %115 = vrot.lane.b32.xlu1 %v1046_v3, %s983_s8  ;;  %113 = vrot.lane.b32.xlu0 %v1032_v1, %s983_s8 }
  0x1e   :  { %119 = vrot.lane.b32.xlu1 %v1041_v2, %s983_s8  ;;  %117 = vrot.lane.b32.xlu0 %v1027_v0, %s983_s8 }
  0x22   :  { %213 = vrot.lane.b32.xlu1 %v1046_v3, %s984_s9  ;;  %211 = vrot.lane.b32.xlu0 %v1032_v1, %s984_s9 }
  0x26   :  { %217 = vrot.lane.b32.xlu1 %v1041_v2, %s984_s9  ;;  %215 = vrot.lane.b32.xlu0 %v1027_v0, %s984_s9 }
  0x2a   :  { %287 = vrot.lane.b32.xlu1 %v1046_v3, %s985_s10  ;;  %285 = vrot.lane.b32.xlu0 %v1032_v1, %s985_s10 }
  0x2e   :  { %291 = vrot.lane.b32.xlu1 %v1041_v2, %s985_s10  ;;  %289 = vrot.lane.b32.xlu0 %v1027_v0, %s985_s10 }
  0x32   :  { %250 = vrot.lane.b32.xlu1 %v1046_v3, %s986_s11  ;;  %248 = vrot.lane.b32.xlu0 %v1032_v1, %s986_s11 }
  0x36   :  { %254 = vrot.lane.b32.xlu1 %v1041_v2, %s986_s11  ;;  %252 = vrot.lane.b32.xlu0 %v1027_v0, %s986_s11 }
  0x3a   :  { %324 = vrot.lane.b32.xlu1 %v1046_v3, %s988_s12  ;;  %322 = vrot.lane.b32.xlu0 %v1032_v1, %s988_s12 }
  0x3e   :  { %328 = vrot.lane.b32.xlu1 %v1041_v2, %s988_s12  ;;  %326 = vrot.lane.b32.xlu0 %v1027_v0, %s988_s12 }
  0x42   :  { %460 = vperm.xlu0 %975, %v457_v5  }
  0x74   :  { %v81_v11 = vpop.permute.xlu1 %80  ;;  %v77_v12 = vpop.permute.xlu0 %76 }
  0x78   :  { %v83_v20 = vpop.permute.xlu1 %82  ;;  %v79_v22 = vpop.permute.xlu0 %78 }
  0x79   :  { %v85_v23 = vsel %vm84_vm0, %v81_v11, %v83_v20  ;;  %v88_v24 = vsel %vm84_vm0, %v83_v20, %v77_v12  ;;  %v86_v25 = vsel %vm84_vm0, %v79_v22, %v81_v11  ;;  %v87_v26 = vsel %vm84_vm0, %v77_v12, %v79_v22 }
  0x7a   :  { %v106_v27 = vmul.f32 %v1141_v16, %v87_v26  ;;  %v105_v28 = vmul.f32 %v1144_v17, %v88_v24  ;;  %v108_v29 = vmul.f32 %v1147_v18, %v85_v23  ;;  %v107_v31 = vmul.f32 %v1151_v21, %v86_v25 }
  0x7b   :  { %v128_v12 = vsub.s32 2, %v1114_v7  ;;  %v1206_v20 = vrot.slane %v1137_v15, %v165_v42  ;;  %v1210_v24 = vrot.slane %v1132_v14, %v165_v42 }
  0x7c   :  { %v110_v32 = vpack.c.bf16 %v106_v27, %v106_v27  ;;  %v40_v33 = vpop.permute.xlu1 %39  ;;  %v38_v34 = vpop.permute.xlu0 %37  ;;  %v109_v39 = vpack.c.bf16 %v105_v28, %v105_v28  ;;  %v112_v40 = vpack.c.bf16 %v108_v29, %v108_v29  ;;  %v111_v43 = vpack.c.bf16 %v107_v31, %v107_v31 }
  0x7d   :  { %v50_v35 = vsel %vm47_vm1, %v38_v34, %v40_v33  ;;  %v1220_v29 = vrot.slane %v1122_v10, %v128_v12 }
  0x7e   :  { %v69_v41 = vmul.f32 %v1166_v30, %v50_v35  ;;  %v364_v44 = vrot.slane %v110_v32, 4  ;;  %v363_v54 = vrot.slane %v109_v39, 4  ;;  %v366_v55 = vrot.slane %v112_v40, 4 }
  0x7f   :  { %v365_v58 = vrot.slane %v111_v43, 4  ;;  %v1230_v43 = vrot.slane %v1127_v13, %v128_v12 }
  0x80   :  { %v44_v45 = vpop.permute.xlu1 %43  ;;  %v42_v46 = vpop.permute.xlu0 %41  ;;  %v73_v47 = vpack.c.bf16 %v69_v41, %v69_v41 }
  0x81   :  { %v51_v48 = vsel %vm47_vm1, %v44_v45, %v38_v34  ;;  %v48_v49 = vsel %vm47_vm1, %v42_v46, %v44_v45  ;;  %v49_v50 = vsel %vm47_vm1, %v40_v33, %v42_v46  ;;  %v226_v33 = vsub.s32 5, %v1114_v7 }
  0x82   :  { %v68_v51 = vmul.f32 %v1172_v36, %v51_v48  ;;  %v70_v52 = vmul.f32 %v1175_v37, %v49_v50  ;;  %v71_v53 = vmul.f32 %v1178_v38, %v48_v49  ;;  %v398_v56 = vsel %vm391_vm2, %v73_v47, %v364_v44 }
  0x83   :  { %479 = vmatprep.subr.bf16.mxu0 %v398_v56  ;;  %v189_v34 = vsub.s32 4, %v1114_v7  ;;  %v1234_v45 = vrot.slane %v1137_v15, %v128_v12  ;;  %v1237_v46 = vrot.slane %v1132_v14, %v128_v12  ;;  %v1241_v49 = vrot.slane %v1127_v13, %v226_v33 }
  0x84   :  { %v72_v59 = vpack.c.bf16 %v68_v51, %v68_v51  ;;  %v74_v60 = vpack.c.bf16 %v70_v52, %v70_v52  ;;  %v75_v61 = vpack.c.bf16 %v71_v53, %v71_v53  ;;  %v153_v62 = vpop.permute.xlu1 %152  ;;  %v151_v63 = vpop.permute.xlu0 %150  ;;  %v1247_v56 = vrot.slane %v1132_v14, %v226_v33 }
  0x85   :  { %v161_v5 = vsel %vm158_vm3, %v151_v63, %v153_v62  ;;  %v1244_v50 = vrot.slane %v1127_v13, %v189_v34  ;;  %v1263_v12 = vrot.slane %v1132_v14, %v189_v34 }
  0x86   :  { %v394_v6 = vsel %vm391_vm2, %v72_v59, %v363_v54  ;;  %v406_v9 = vsel %vm391_vm2, %v75_v61, %v366_v55  ;;  %v402_v11 = vsel %vm391_vm2, %v74_v60, %v365_v58  ;;  %v180_v22 = vmul.f32 %v1194_v57, %v161_v5 }
  0x87   :  { %480 = vmatpush1.bf16.msra.mxu0 %v394_v6  ;;  %520 = vmatprep.subr.bf16.mxu1 %v406_v9  ;;  %v1256_v61 = vrot.slane %v1122_v10, %v189_v34 }
  0x88   :  { %v157_v23 = vpop.permute.xlu1 %156  ;;  %521 = vmatpush1.bf16.msra.mxu1 %v402_v11  ;;  %v155_v25 = vpop.permute.xlu0 %154  ;;  %v184_v35 = vpack.c.bf16 %v180_v22, %v180_v22  ;;  %v1266_v22 = vrot.slane %v1137_v15, %v189_v34 }
  0x89   :  { %v162_v26 = vsel %vm158_vm3, %v157_v23, %v151_v63  ;;  %v159_v27 = vsel %vm158_vm3, %v155_v25, %v157_v23  ;;  %v160_v28 = vsel %vm158_vm3, %v153_v62, %v155_v25 }
  0x8a   :  { %v179_v31 = vmul.f32 %v1203_v19, %v162_v26  ;;  %v181_v32 = vmul.f32 %v1206_v20, %v160_v28  ;;  %v182_v39 = vmul.f32 %v1210_v24, %v159_v27  ;;  %v372_v51 = vrot.slane %v184_v35, 4 }
  0x8b   :  { %v1271_v35 = vrot.slane %v1122_v10, %v226_v33 }
  0x8c   :  { %v116_v40 = vpop.permute.xlu1 %115  ;;  %v114_v41 = vpop.permute.xlu0 %113  ;;  %v183_v47 = vpack.c.bf16 %v179_v31, %v179_v31  ;;  %v185_v48 = vpack.c.bf16 %v181_v32, %v181_v32  ;;  %v186_v52 = vpack.c.bf16 %v182_v39, %v182_v39  ;;  %v1274_v39 = vrot.slane %v1137_v15, %v226_v33 }
  0x8d   :  { %v124_v42 = vsel %vm121_vm4, %v114_v41, %v116_v40  ;;  %v206_v33 = vmul.f32 %v1041_v2, %v1263_v12 }
  0x8e   :  { %v143_v44 = vmul.f32 %v1220_v29, %v124_v42  ;;  %v371_v9 = vrot.slane %v183_v47, 4  ;;  %v373_v11 = vrot.slane %v185_v48, 4  ;;  %v374_v23 = vrot.slane %v186_v52, 4 }
  0x8f   :  { %v204_v47 = vmul.f32 %v1256_v61, %v1046_v3  ;;  %v205_v48 = vmul.f32 %v1027_v0, %v1266_v22  ;;  %v300_v0 = vsub.s32 7, %v1114_v7 }
  0x90   :  { %v147_v53 = vpack.c.bf16 %v143_v44, %v143_v44  ;;  %v120_v54 = vpop.permute.xlu1 %119  ;;  %v118_v55 = vpop.permute.xlu0 %117 }
  0x91   :  { %v125_v58 = vsel %vm121_vm4, %v120_v54, %v114_v41  ;;  %v122_v59 = vsel %vm121_vm4, %v118_v55, %v120_v54  ;;  %v123_v60 = vsel %vm121_vm4, %v116_v40, %v118_v55  ;;  %v203_v40 = vmul.f32 %v1244_v50, %v1032_v1 }
  0x92   :  { %v142_v62 = vmul.f32 %v1230_v43, %v125_v58  ;;  %v144_v63 = vmul.f32 %v1234_v45, %v123_v60  ;;  %v145_v5 = vmul.f32 %v1237_v46, %v122_v59  ;;  %v414_v6 = vsel %vm391_vm2, %v147_v53, %v372_v51 }
  0x93   :  { %481 = vmatprep.subr.bf16.mxu0 %v414_v6  ;;  %v208_v59 = vpack.c.bf16 %v204_v47, %v204_v47  ;;  %v210_v60 = vpack.c.bf16 %v206_v33, %v206_v33 }
  0x94   :  { %v146_v25 = vpack.c.bf16 %v142_v62, %v142_v62  ;;  %v148_v26 = vpack.c.bf16 %v144_v63, %v144_v63  ;;  %v149_v27 = vpack.c.bf16 %v145_v5, %v145_v5  ;;  %v214_v28 = vpop.permute.xlu1 %213  ;;  %v212_v31 = vpop.permute.xlu0 %211  ;;  %v207_v62 = vpack.c.bf16 %v203_v40, %v203_v40 }
  0x95   :  { %v222_v32 = vsel %vm219_vm5, %v212_v31, %v214_v28  ;;  %v209_v63 = vpack.c.bf16 %v205_v48, %v205_v48  ;;  %v1306_v40 = vrot.slane %v1122_v10, %v300_v0 }
  0x96   :  { %v240_v34 = vmul.f32 %v1241_v49, %v222_v32  ;;  %v410_v41 = vsel %vm391_vm2, %v146_v25, %v371_v9  ;;  %v422_v42 = vsel %vm391_vm2, %v149_v27, %v374_v23  ;;  %v418_v44 = vsel %vm391_vm2, %v148_v26, %v373_v11 }
  0x97   :  { %482 = vmatpush1.bf16.msra.mxu0 %v410_v41  ;;  %522 = vmatprep.subr.bf16.mxu1 %v422_v42  ;;  %v1303_v32 = vrot.slane %v1132_v14, %v300_v0  ;;  %v263_v41 = vsub.s32 6, %v1114_v7 }
  0x98   :  { %v244_v1 = vpack.c.bf16 %v240_v34, %v240_v34  ;;  %v218_v51 = vpop.permute.xlu1 %217  ;;  %523 = vmatpush1.bf16.msra.mxu1 %v418_v44  ;;  %v216_v52 = vpop.permute.xlu0 %215  ;;  %v1309_v34 = vrot.slane %v1137_v15, %v300_v0 }
  0x99   :  { %v223_v53 = vsel %vm219_vm5, %v218_v51, %v212_v31  ;;  %v220_v54 = vsel %vm219_vm5, %v216_v52, %v218_v51  ;;  %v221_v55 = vsel %vm219_vm5, %v214_v28, %v216_v52  ;;  %v1300_v31 = vrot.slane %v1127_v13, %v300_v0 }
  0x9a   :  { %v243_v3 = vmul.f32 %v1247_v56, %v223_v53  ;;  %v241_v2 = vmul.f32 %v1271_v35, %v221_v55  ;;  %v242_v58 = vmul.f32 %v1274_v39, %v220_v54  ;;  %v379_v5 = vrot.slane %v244_v1, 4 }
  0x9c   :  { %v247_v6 = vpack.c.bf16 %v243_v3, %v243_v3  ;;  %v245_v9 = vpack.c.bf16 %v241_v2, %v241_v2  ;;  %v246_v11 = vpack.c.bf16 %v242_v58, %v242_v58  ;;  %v288_v23 = vpop.permute.xlu1 %287  ;;  %v286_v25 = vpop.permute.xlu0 %285  ;;  %v426_v48 = vsel %vm391_vm2, %v207_v62, %v379_v5 }
  0x9d   :  { %v296_v7 = vsel %vm293_vm6, %v286_v25, %v288_v23  ;;  %v1328_v3 = vrot.slane %v1127_v13, %v263_v41  ;;  %v1335_v62 = vrot.slane %v1132_v14, %v263_v41  ;;  %v1341_v5 = vrot.slane %v1137_v15, %v263_v41 }
  0x9e   :  { %v382_v26 = vrot.slane %v247_v6, 4  ;;  %v380_v27 = vrot.slane %v245_v9, 4  ;;  %v381_v28 = vrot.slane %v246_v11, 4 }
  0xa0   :  { %v292_v42 = vpop.permute.xlu1 %291  ;;  %v290_v44 = vpop.permute.xlu0 %289  ;;  %v430_v47 = vsel %vm391_vm2, %v208_v59, %v380_v27  ;;  %v438_v33 = vsel %vm391_vm2, %v210_v60, %v382_v26  ;;  %v434_v1 = vsel %vm391_vm2, %v209_v63, %v381_v28  ;;  %v314_v59 = vmul.f32 %v1300_v31, %v296_v7 }
  0xa1   :  { %v297_v51 = vsel %vm293_vm6, %v292_v42, %v286_v25  ;;  %v294_v52 = vsel %vm293_vm6, %v290_v44, %v292_v42  ;;  %v295_v53 = vsel %vm293_vm6, %v288_v23, %v290_v44  ;;  %483 = vmatprep.subr.bf16.mxu0 %v430_v47  ;;  %524 = vmatprep.subr.bf16.mxu1 %v438_v33  ;;  %v1357_v33 = vld [vmem:[%s1631_s1 + $0x20] ss:$0 sm:$0xff] }
  0xa2   :  { %484 = vmatpush1.bf16.msra.mxu0 %v426_v48  ;;  %525 = vmatpush1.bf16.msra.mxu1 %v434_v1  ;;  %v317_v54 = vmul.f32 %v1303_v32, %v297_v51  ;;  %v315_v55 = vmul.f32 %v1306_v40, %v295_v53  ;;  %v316_v2 = vmul.f32 %v1309_v34, %v294_v52 }
  0xa3   :  { %v1338_v63 = vrot.slane %v1122_v10, %v263_v41  ;;  %v318_v26 = vpack.c.bf16 %v314_v59, %v314_v59 }
  0xa4   :  { %v251_v58 = vpop.permute.xlu1 %250  ;;  %v249_v0 = vpop.permute.xlu0 %248  ;;  %v321_v13 = vpack.c.bf16 %v317_v54, %v317_v54  ;;  %v319_v6 = vpack.c.bf16 %v315_v55, %v315_v55  ;;  %v320_v11 = vpack.c.bf16 %v316_v2, %v316_v2 }
  0xa5   :  { %v259_v60 = vsel %vm256_vm7, %v249_v0, %v251_v58  ;;  %v387_v54 = vrot.slane %v318_v26, 4 }
  0xa6   :  { %v277_v9 = vmul.f32 %v1328_v3, %v259_v60  ;;  %v390_v42 = vrot.slane %v321_v13, 4  ;;  %v388_v44 = vrot.slane %v319_v6, 4  ;;  %v389_v48 = vrot.slane %v320_v11, 4  ;;  %v1368_v60 = vld [vmem:[%s1631_s1 + $0x38] ss:$0 sm:$0xff] }
  0xa7   :  { %v1373_v13 = vld [vmem:[%s1631_s1 + $0x28] ss:$0 sm:$0xff]  ;;  %v1378_v6 = vld [vmem:[%s1631_s1 + $0x30] ss:$0 sm:$0xff] }
  0xa8   :  { %v255_v23 = vpop.permute.xlu1 %254  ;;  %v253_v25 = vpop.permute.xlu0 %252  ;;  %v281_v47 = vpack.c.bf16 %v277_v9, %v277_v9 }
  0xa9   :  { %v260_v27 = vsel %vm256_vm7, %v255_v23, %v249_v0  ;;  %v257_v14 = vsel %vm256_vm7, %v253_v25, %v255_v23  ;;  %v258_v10 = vsel %vm256_vm7, %v251_v58, %v253_v25 }
  0xaa   :  { %v280_v15 = vmul.f32 %v1335_v62, %v260_v27  ;;  %v278_v28 = vmul.f32 %v1338_v63, %v258_v10  ;;  %v279_v41 = vmul.f32 %v1341_v5, %v257_v14  ;;  %v442_v9 = vsel %vm391_vm2, %v281_v47, %v387_v54 }
  0xac   :  { %v284_v1 = vpack.c.bf16 %v280_v15, %v280_v15  ;;  %v282_v51 = vpack.c.bf16 %v278_v28, %v278_v28  ;;  %v283_v52 = vpack.c.bf16 %v279_v41, %v279_v41  ;;  %v325_v53 = vpop.permute.xlu1 %324  ;;  %v323_v7 = vpop.permute.xlu0 %322 }
  0xad   :  { %v333_v55 = vsel %vm330_vm8, %v323_v7, %v325_v53 }
  0xae   :  { %v351_v2 = vmul.f32 %v1357_v33, %v333_v55  ;;  %v446_v58 = vsel %vm391_vm2, %v282_v51, %v388_v44  ;;  %v454_v0 = vsel %vm391_vm2, %v284_v1, %v390_v42  ;;  %v450_v59 = vsel %vm391_vm2, %v283_v52, %v389_v48  ;;  %v456_v1 = vld [vmem:[%s1632_s2] sm:$0xf] }
  0xaf   :  { %485 = vmatprep.subr.bf16.mxu0 %v446_v58  ;;  %526 = vmatprep.subr.bf16.mxu1 %v454_v0 }
  0xb0   :  { %v329_v11 = vpop.permute.xlu1 %328  ;;  %527 = vmatpush1.bf16.msra.mxu1 %v450_v59  ;;  %v327_v23 = vpop.permute.xlu0 %326  ;;  %486 = vmatpush1.bf16.msra.mxu0 %v442_v9  ;;  %v355_v14 = vpack.c.bf16 %v351_v2, %v351_v2 }
  0xb1   :  { %v334_v25 = vsel %vm330_vm8, %v329_v11, %v323_v7  ;;  %v331_v26 = vsel %vm330_vm8, %v327_v23, %v329_v11  ;;  %v332_v27 = vsel %vm330_vm8, %v325_v53, %v327_v23 }
  0xb2   :  { %v354_v10 = vmul.f32 %v1368_v60, %v334_v25  ;;  %v352_v15 = vmul.f32 %v1373_v13, %v332_v27  ;;  %v353_v28 = vmul.f32 %v1378_v6, %v331_v26  ;;  %v468_v47 = vsel %vm391_vm2, %v355_v14, 0  ;;  %v830_v14 = vld [vmem:[%s1633_s5] sm:$0xff] }
  0xb4   :  { %v358_v41 = vpack.c.bf16 %v354_v10, %v354_v10  ;;  %v356_v42 = vpack.c.bf16 %v352_v15, %v352_v15  ;;  %v357_v44 = vpack.c.bf16 %v353_v28, %v353_v28 }
  0xb6   :  { %956 = vmatprep.subr.msk.bf16.mxu0 %vm391_vm2, %v356_v42  ;;  %958 = vmatprep.subr.msk.bf16.mxu1 %vm391_vm2, %v358_v41  ;;  %v474_v48 = vsel %vm391_vm2, %v357_v44, 0 }
  0xb7   :  { %488 = vmatpush1.bf16.msra.mxu0 %v468_v47  ;;  %529 = vmatpush1.bf16.msra.mxu1 %v474_v48 }
  0xba   :  { %957 = vmatmul.mubr.msk.bf16.vlgmr.msra.gmra.mrb[0].mxu0 %vm463_vm9, %v456_v1  ;;  %959 = vmatmul.mubr.msk.bf16.vlgmr.msra.gmra.mrb[0].mxu1 %vm463_vm9, %v456_v1 }
  0xbb   :  { %883 = vmatprep.mubr.bf16.mxu0 %v987_v4  ;;  %924 = vmatprep.mubr.bf16.mxu1 %v987_v4 }
  0xc1   :  { %v461_v51 = vpop.permute.xlu0 %460 }
 0x18d   :  { %v554_v52 = vpop.f32.mrb[0].mxu1  ;;  %v513_v53 = vpop.f32.mrb[0].mxu0 }
 0x18e   :  { %v555_v7 = vadd.f32 %v554_v52, %v461_v51  ;;  %v514_v54 = vadd.f32 %v513_v53, %v461_v51  ;;  %v515_v55 = vpop.f32.mrb[1].mxu0  ;;  %v556_v2 = vpop.f32.mrb[1].mxu1 }
 0x18f   :  { %v517_v58 = vpop.f32.mrb[2].mxu0  ;;  %v558_v0 = vpop.f32.mrb[2].mxu1  ;;  %v516_v11 = vadd.f32 %v515_v55, %v461_v51  ;;  %v557_v26 = vadd.f32 %v556_v2, %v461_v51 }
 0x190   :  { %v1401_v59 = vmax.f32 %v555_v7, 0.0  ;;  %v1403_v9 = vmax.f32 %v514_v54, 0.0  ;;  %v518_v23 = vpop.f32.mrb[3].mxu0  ;;  %v559_v25 = vpop.f32.mrb[3].mxu1 }
 0x191   :  { %v1409_v4 = vmax.f32 %v516_v11, 0.0  ;;  %v1415_v27 = vmax.f32 %v557_v26, 0.0 }
 0x192   :  { %589 = vrot.lane.b32.xlu0 %v1401_v59, %s980_s25  ;;  %585 = vrot.lane.b32.xlu1 %v1403_v9, %s980_s25 }
 0x196   :  { %565 = vrot.lane.b32.xlu0 %v1403_v9, %s981_s30  ;;  %587 = vrot.lane.b32.xlu1 %v1409_v4, %s980_s25 }
 0x19a   :  { %569 = vrot.lane.b32.xlu0 %v1401_v59, %s981_s30  ;;  %591 = vrot.lane.b32.xlu1 %v1415_v27, %s980_s25 }
 0x19e   :  { %625 = vrot.lane.b32.xlu0 %v1403_v9, %s982_s7  ;;  %567 = vrot.lane.b32.xlu1 %v1409_v4, %s981_s30 }
 0x1a2   :  { %629 = vrot.lane.b32.xlu0 %v1401_v59, %s982_s7  ;;  %571 = vrot.lane.b32.xlu1 %v1415_v27, %s981_s30 }
 0x1a6   :  { %605 = vrot.lane.b32.xlu0 %v1403_v9, %s983_s8  ;;  %627 = vrot.lane.b32.xlu1 %v1409_v4, %s982_s7 }
 0x1aa   :  { %609 = vrot.lane.b32.xlu0 %v1401_v59, %s983_s8  ;;  %631 = vrot.lane.b32.xlu1 %v1415_v27, %s982_s7 }
 0x1ae   :  { %653 = vrot.lane.b32.xlu0 %v1403_v9, %s984_s9  ;;  %607 = vrot.lane.b32.xlu1 %v1409_v4, %s983_s8 }
 0x1b2   :  { %657 = vrot.lane.b32.xlu0 %v1401_v59, %s984_s9  ;;  %611 = vrot.lane.b32.xlu1 %v1415_v27, %s983_s8 }
 0x1b6   :  { %693 = vrot.lane.b32.xlu0 %v1403_v9, %s985_s10  ;;  %655 = vrot.lane.b32.xlu1 %v1409_v4, %s984_s9 }
 0x1ba   :  { %697 = vrot.lane.b32.xlu0 %v1401_v59, %s985_s10  ;;  %659 = vrot.lane.b32.xlu1 %v1415_v27, %s984_s9 }
 0x1be   :  { %673 = vrot.lane.b32.xlu0 %v1403_v9, %s986_s11  ;;  %695 = vrot.lane.b32.xlu1 %v1409_v4, %s985_s10 }
 0x1c2   :  { %677 = vrot.lane.b32.xlu0 %v1401_v59, %s986_s11  ;;  %699 = vrot.lane.b32.xlu1 %v1415_v27, %s985_s10 }
 0x1c6   :  { %713 = vrot.lane.b32.xlu0 %v1403_v9, %s988_s12  ;;  %675 = vrot.lane.b32.xlu1 %v1409_v4, %s986_s11 }
 0x1ca   :  { %717 = vrot.lane.b32.xlu0 %v1401_v59, %s988_s12  ;;  %679 = vrot.lane.b32.xlu1 %v1415_v27, %s986_s11 }
 0x1ce   :  { %833 = vperm.xlu0 %975, %v830_v14   ;;  %715 = vrot.lane.b32.xlu1 %v1409_v4, %s988_s12 }
 0x1d2   :  { %719 = vrot.lane.b32.xlu1 %v1415_v27, %s988_s12 }
 0x204   :  { %v590_v10 = vpop.permute.xlu0 %589  ;;  %v586_v15 = vpop.permute.xlu1 %585 }
 0x208   :  { %v566_v28 = vpop.permute.xlu0 %565  ;;  %v588_v41 = vpop.permute.xlu1 %587 }
 0x209   :  { %v595_v42 = vsel %vm84_vm0, %v586_v15, %v588_v41  ;;  %v594_v52 = vsel %vm84_vm0, %v588_v41, %v590_v10 }
 0x20a   :  { %v598_v44 = vmul.f32 %v595_v42, %v1141_v16  ;;  %v599_v16 = vmul.f32 %v594_v52, %v1151_v21 }
 0x20c   :  { %v570_v47 = vpop.permute.xlu0 %569  ;;  %v592_v48 = vpop.permute.xlu1 %591  ;;  %v602_v53 = vpack.c.bf16 %v598_v44, %v598_v44 }
 0x20d   :  { %v593_v1 = vsel %vm84_vm0, %v590_v10, %v592_v48  ;;  %v596_v51 = vsel %vm84_vm0, %v592_v48, %v586_v15  ;;  %v603_v15 = vpack.c.bf16 %v599_v16, %v599_v16 }
 0x20e   :  { %v597_v7 = vmul.f32 %v596_v51, %v1144_v17  ;;  %v600_v54 = vmul.f32 %v593_v1, %v1147_v18  ;;  %v738_v25 = vrot.slane %v602_v53, 4 }
 0x210   :  { %v626_v55 = vpop.permute.xlu0 %625  ;;  %v568_v2 = vpop.permute.xlu1 %567  ;;  %v601_v26 = vpack.c.bf16 %v597_v7, %v597_v7  ;;  %v604_v14 = vpack.c.bf16 %v600_v54, %v600_v54  ;;  %v739_v54 = vrot.slane %v603_v15, 4 }
 0x211   :  { %v574_v58 = vsel %vm47_vm1, %v568_v2, %v570_v47  ;;  %v575_v0 = vsel %vm47_vm1, %v566_v28, %v568_v2 }
 0x212   :  { %v578_v11 = vmul.f32 %v575_v0, %v1166_v30  ;;  %v579_v23 = vmul.f32 %v574_v58, %v1175_v37  ;;  %v737_v48 = vrot.slane %v601_v26, 4  ;;  %v740_v1 = vrot.slane %v604_v14, 4 }
 0x214   :  { %v582_v17 = vpack.c.bf16 %v578_v11, %v578_v11  ;;  %v630_v10 = vpop.permute.xlu0 %629  ;;  %v572_v18 = vpop.permute.xlu1 %571  ;;  %v583_v37 = vpack.c.bf16 %v579_v23, %v579_v23 }
 0x215   :  { %v573_v21 = vsel %vm47_vm1, %v570_v47, %v572_v18  ;;  %v576_v41 = vsel %vm47_vm1, %v572_v18, %v566_v28 }
 0x216   :  { %v577_v42 = vmul.f32 %v576_v41, %v1172_v36  ;;  %v580_v44 = vmul.f32 %v573_v21, %v1178_v38  ;;  %v771_v30 = vsel %vm391_vm2, %v582_v17, %v738_v25  ;;  %v775_v38 = vsel %vm391_vm2, %v583_v37, %v739_v54 }
 0x217   :  { %851 = vmatprep.subr.bf16.mxu0 %v771_v30 }
 0x218   :  { %v581_v51 = vpack.c.bf16 %v577_v42, %v577_v42  ;;  %v584_v52 = vpack.c.bf16 %v580_v44, %v580_v44  ;;  %v606_v53 = vpop.permute.xlu0 %605  ;;  %v628_v7 = vpop.permute.xlu1 %627 }
 0x219   :  { %v635_v47 = vsel %vm158_vm3, %v626_v55, %v628_v7  ;;  %v634_v23 = vsel %vm158_vm3, %v628_v7, %v630_v10 }
 0x21a   :  { %v767_v28 = vsel %vm391_vm2, %v581_v51, %v737_v48  ;;  %v779_v36 = vsel %vm391_vm2, %v584_v52, %v740_v1  ;;  %v638_v2 = vmul.f32 %v635_v47, %v1194_v57  ;;  %v639_v57 = vmul.f32 %v634_v23, %v1206_v20 }
 0x21b   :  { %852 = vmatpush1.bf16.msra.mxu0 %v767_v28  ;;  %892 = vmatprep.subr.bf16.mxu1 %v779_v36  ;;  %v645_v52 = vmul.f32 %v1403_v9, %v1244_v50 }
 0x21c   :  { %v610_v16 = vpop.permute.xlu0 %609  ;;  %893 = vmatpush1.bf16.msra.mxu1 %v775_v38  ;;  %v632_v58 = vpop.permute.xlu1 %631  ;;  %v642_v25 = vpack.c.bf16 %v638_v2, %v638_v2  ;;  %v643_v37 = vpack.c.bf16 %v639_v57, %v639_v57 }
 0x21d   :  { %v633_v0 = vsel %vm158_vm3, %v630_v10, %v632_v58  ;;  %v636_v11 = vsel %vm158_vm3, %v632_v58, %v626_v55 }
 0x21e   :  { %v637_v26 = vmul.f32 %v636_v11, %v1203_v19  ;;  %v640_v14 = vmul.f32 %v633_v0, %v1210_v24  ;;  %v746_v10 = vrot.slane %v642_v25, 4  ;;  %v747_v2 = vrot.slane %v643_v37, 4 }
 0x220   :  { %v654_v17 = vpop.permute.xlu0 %653  ;;  %v608_v18 = vpop.permute.xlu1 %607  ;;  %v641_v42 = vpack.c.bf16 %v637_v26, %v637_v26  ;;  %v644_v44 = vpack.c.bf16 %v640_v14, %v640_v14 }
 0x221   :  { %v614_v15 = vsel %vm121_vm4, %v608_v18, %v610_v16  ;;  %v615_v21 = vsel %vm121_vm4, %v606_v53, %v608_v18  ;;  %v649_v18 = vpack.c.bf16 %v645_v52, %v645_v52 }
 0x222   :  { %v618_v55 = vmul.f32 %v615_v21, %v1220_v29  ;;  %v619_v41 = vmul.f32 %v614_v15, %v1234_v45  ;;  %v745_v7 = vrot.slane %v641_v42, 4  ;;  %v748_v54 = vrot.slane %v644_v44, 4 }
 0x224   :  { %v622_v19 = vpack.c.bf16 %v618_v55, %v618_v55  ;;  %v658_v30 = vpop.permute.xlu0 %657  ;;  %v612_v24 = vpop.permute.xlu1 %611  ;;  %v623_v45 = vpack.c.bf16 %v619_v41, %v619_v41 }
 0x225   :  { %v613_v20 = vsel %vm121_vm4, %v610_v16, %v612_v24  ;;  %v616_v48 = vsel %vm121_vm4, %v612_v24, %v606_v53 }
 0x226   :  { %v617_v1 = vmul.f32 %v616_v48, %v1230_v43  ;;  %v620_v51 = vmul.f32 %v613_v20, %v1237_v46  ;;  %v787_v29 = vsel %vm391_vm2, %v622_v19, %v746_v10  ;;  %v646_v46 = vmul.f32 %v1409_v4, %v1256_v61 }
 0x227   :  { %853 = vmatprep.subr.bf16.mxu0 %v787_v29  ;;  %v791_v0 = vsel %vm391_vm2, %v623_v45, %v747_v2  ;;  %v648_v61 = vmul.f32 %v1415_v27, %v1263_v12 }
 0x228   :  { %v621_v47 = vpack.c.bf16 %v617_v1, %v617_v1  ;;  %v624_v28 = vpack.c.bf16 %v620_v51, %v620_v51  ;;  %v694_v36 = vpop.permute.xlu0 %693  ;;  %v656_v38 = vpop.permute.xlu1 %655  ;;  %v650_v14 = vpack.c.bf16 %v646_v46, %v646_v46 }
 0x229   :  { %v662_v53 = vsel %vm219_vm5, %v656_v38, %v658_v30  ;;  %v663_v43 = vsel %vm219_vm5, %v654_v17, %v656_v38 }
 0x22a   :  { %v665_v16 = vmul.f32 %v663_v43, %v1241_v49  ;;  %v666_v50 = vmul.f32 %v662_v53, %v1271_v35  ;;  %v783_v9 = vsel %vm391_vm2, %v621_v47, %v745_v7  ;;  %v795_v58 = vsel %vm391_vm2, %v624_v28, %v748_v54 }
 0x22b   :  { %854 = vmatpush1.bf16.msra.mxu0 %v783_v9  ;;  %894 = vmatprep.subr.bf16.mxu1 %v795_v58  ;;  %v647_v49 = vmul.f32 %v1401_v59, %v1266_v22 }
 0x22c   :  { %v669_v11 = vpack.c.bf16 %v665_v16, %v665_v16  ;;  %v670_v23 = vpack.c.bf16 %v666_v50, %v666_v50  ;;  %v698_v25 = vpop.permute.xlu0 %697  ;;  %895 = vmatpush1.bf16.msra.mxu1 %v791_v0  ;;  %v660_v26 = vpop.permute.xlu1 %659 }
 0x22d   :  { %v661_v35 = vsel %vm219_vm5, %v658_v30, %v660_v26  ;;  %v664_v4 = vsel %vm219_vm5, %v660_v26, %v654_v17 }
 0x22e   :  { %v753_v57 = vrot.slane %v669_v11, 4  ;;  %v754_v15 = vrot.slane %v670_v23, 4  ;;  %v667_v21 = vmul.f32 %v661_v35, %v1274_v39  ;;  %v668_v55 = vmul.f32 %v664_v4, %v1247_v56 }
 0x22f   :  { %v652_v39 = vpack.c.bf16 %v648_v61, %v648_v61  ;;  %v651_v56 = vpack.c.bf16 %v647_v49, %v647_v49 }
 0x230   :  { %v671_v41 = vpack.c.bf16 %v667_v21, %v667_v21  ;;  %v672_v10 = vpack.c.bf16 %v668_v55, %v668_v55  ;;  %v674_v12 = vpop.permute.xlu0 %673  ;;  %v696_v27 = vpop.permute.xlu1 %695  ;;  %v803_v22 = vsel %vm391_vm2, %v650_v14, %v754_v15  ;;  %v799_v59 = vsel %vm391_vm2, %v649_v18, %v753_v57 }
 0x231   :  { %v702_v42 = vsel %vm293_vm6, %v696_v27, %v698_v25  ;;  %v703_v17 = vsel %vm293_vm6, %v694_v36, %v696_v27  ;;  %855 = vmatprep.subr.bf16.mxu0 %v803_v22 }
 0x232   :  { %v755_v44 = vrot.slane %v671_v41, 4  ;;  %v756_v19 = vrot.slane %v672_v10, 4  ;;  %856 = vmatpush1.bf16.msra.mxu0 %v799_v59  ;;  %v705_v30 = vmul.f32 %v703_v17, %v1300_v31  ;;  %v706_v24 = vmul.f32 %v702_v42, %v1306_v40 }
 0x234   :  { %v678_v37 = vpop.permute.xlu0 %677  ;;  %v700_v20 = vpop.permute.xlu1 %699  ;;  %v811_v48 = vsel %vm391_vm2, %v652_v39, %v756_v19  ;;  %v807_v1 = vsel %vm391_vm2, %v651_v56, %v755_v44  ;;  %v709_v45 = vpack.c.bf16 %v705_v30, %v705_v30  ;;  %v710_v52 = vpack.c.bf16 %v706_v24, %v706_v24  ;;  %v976_v19 = vld [vmem:[%s1629_s0] sm:$0xff]  ;;  %v977_v30 = vld [vmem:[%s1629_s0 + $0x8] sm:$0xff] }
 0x235   :  { %v701_v51 = vsel %vm293_vm6, %v698_v25, %v700_v20  ;;  %v704_v29 = vsel %vm293_vm6, %v700_v20, %v694_v36  ;;  %896 = vmatprep.subr.bf16.mxu1 %v811_v48 }
 0x236   :  { %897 = vmatpush1.bf16.msra.mxu1 %v807_v1  ;;  %v707_v31 = vmul.f32 %v701_v51, %v1309_v34  ;;  %v708_v40 = vmul.f32 %v704_v29, %v1303_v32  ;;  %v761_v2 = vrot.slane %v709_v45, 4  ;;  %v762_v53 = vrot.slane %v710_v52, 4  ;;  %v978_v52 = vld [vmem:[%s1629_s0 + $0x10] sm:$0xff] }
 0x238   :  { %v676_v7 = vpop.permute.xlu1 %675  ;;  %v714_v28 = vpop.permute.xlu0 %713  ;;  %v711_v43 = vpack.c.bf16 %v707_v31, %v707_v31  ;;  %v712_v46 = vpack.c.bf16 %v708_v40, %v708_v40 }
 0x239   :  { %v682_v54 = vsel %vm256_vm7, %v676_v7, %v678_v37  ;;  %v683_v47 = vsel %vm256_vm7, %v674_v12, %v676_v7  ;;  %v979_v7 = vld [vmem:[%s1629_s0 + $0x18] sm:$0xff] }
 0x23a   :  { %v685_v38 = vmul.f32 %v683_v47, %v1328_v3  ;;  %v686_v36 = vmul.f32 %v682_v54, %v1338_v63  ;;  %v763_v11 = vrot.slane %v711_v43, 4  ;;  %v764_v23 = vrot.slane %v712_v46, 4 }
 0x23c   :  { %v689_v16 = vpack.c.bf16 %v685_v38, %v685_v38  ;;  %v690_v34 = vpack.c.bf16 %v686_v36, %v686_v36  ;;  %v680_v50 = vpop.permute.xlu1 %679  ;;  %v718_v25 = vpop.permute.xlu0 %717 }
 0x23d   :  { %v681_v32 = vsel %vm256_vm7, %v678_v37, %v680_v50  ;;  %v684_v9 = vsel %vm256_vm7, %v680_v50, %v674_v12  ;;  %v829_v12 = vld [vmem:[%s1634_s4] sm:$0xf] }
 0x23e   :  { %v687_v58 = vmul.f32 %v681_v32, %v1341_v5  ;;  %v688_v0 = vmul.f32 %v684_v9, %v1335_v62  ;;  %v819_v3 = vsel %vm391_vm2, %v690_v34, %v762_v53  ;;  %v815_v63 = vsel %vm391_vm2, %v689_v16, %v761_v2 }
 0x23f   :  { %857 = vmatprep.subr.bf16.mxu0 %v819_v3 }
 0x240   :  { %v691_v26 = vpack.c.bf16 %v687_v58, %v687_v58  ;;  %v692_v61 = vpack.c.bf16 %v688_v0, %v688_v0  ;;  %v716_v49 = vpop.permute.xlu1 %715  ;;  %858 = vmatpush1.bf16.msra.mxu0 %v815_v63 }
 0x241   :  { %v722_v35 = vsel %vm330_vm8, %v716_v49, %v718_v25  ;;  %v723_v5 = vsel %vm330_vm8, %v714_v28, %v716_v49 }
 0x242   :  { %v725_v62 = vmul.f32 %v1357_v33, %v723_v5  ;;  %v726_v4 = vmul.f32 %v1373_v13, %v722_v35  ;;  %v827_v14 = vsel %vm391_vm2, %v692_v61, %v764_v23  ;;  %v823_v18 = vsel %vm391_vm2, %v691_v26, %v763_v11 }
 0x243   :  { %898 = vmatprep.subr.bf16.mxu1 %v827_v14 }
 0x244   :  { %v729_v57 = vpack.c.bf16 %v725_v62, %v725_v62  ;;  %v730_v15 = vpack.c.bf16 %v726_v4, %v726_v4  ;;  %899 = vmatpush1.bf16.msra.mxu1 %v823_v18  ;;  %v720_v21 = vpop.permute.xlu1 %719 }
 0x245   :  { %v721_v55 = vsel %vm330_vm8, %v718_v25, %v720_v21  ;;  %v724_v41 = vsel %vm330_vm8, %v720_v21, %v714_v28 }
 0x246   :  { %v727_v10 = vmul.f32 %v1378_v6, %v721_v55  ;;  %v728_v33 = vmul.f32 %v1368_v60, %v724_v41  ;;  %960 = vmatprep.subr.msk.bf16.mxu0 %vm391_vm2, %v730_v15  ;;  %v840_v13 = vsel %vm391_vm2, %v729_v57, 0 }
 0x247   :  { %860 = vmatpush1.bf16.msra.mxu0 %v840_v13 }
 0x248   :  { %v731_v27 = vpack.c.bf16 %v727_v10, %v727_v10  ;;  %v732_v22 = vpack.c.bf16 %v728_v33, %v728_v33 }
 0x24a   :  { %961 = vmatmul.mubr.msk.bf16.vlgmr.msra.gmra.mrb[4].mxu0 %vm463_vm9, %v829_v12  ;;  %962 = vmatprep.subr.msk.bf16.mxu1 %vm391_vm2, %v732_v22  ;;  %v846_v8 = vsel %vm391_vm2, %v731_v27, 0 }
 0x24b   :  { %901 = vmatpush1.bf16.msra.mxu1 %v846_v8 }
 0x24d   :  { %v834_v60 = vpop.permute.xlu0 %833 }
 0x24e   :  { %963 = vmatmul.mubr.msk.bf16.vlgmr.msra.gmra.mrb[4].mxu1 %vm463_vm9, %v829_v12 }
 0x31d   :  { %v885_v6 = vpop.f32.mrb[4].mxu0 }
 0x31e   :  { %v886_v59 = vadd.f32 %v885_v6, %v834_v60  ;;  %v887_v42 = vpop.f32.mrb[5].mxu0 }
 0x31f   :  { %v888_v17 = vadd.f32 %v887_v42, %v834_v60  ;;  %v889_v44 = vpop.f32.mrb[6].mxu0 }
 0x320   :  { %v933_v39 = vadd.f32 %v976_v19, %v886_v59  ;;  %v890_v56 = vpop.f32.mrb[7].mxu0 }
 0x321   :  { %v934_v24 = vadd.f32 %v977_v30, %v888_v17  ;;  %v926_v37 = vpop.f32.mrb[4].mxu1 }
 0x322   :  { %v937_v20 = vmax.f32 %v933_v39, 0.0  ;;  %v927_v48 = vadd.f32 %v926_v37, %v834_v60  ;;  %v928_v1 = vpop.f32.mrb[5].mxu1 }
 0x323   :  { %v938_v51 = vmax.f32 %v934_v24, 0.0  ;;  %v929_v29 = vadd.f32 %v928_v1, %v834_v60  ;;  %v930_v45 = vpop.f32.mrb[6].mxu1 }
 0x324   :  { %941 = vst [vmem:[%s1635_s6] sm:$0xff] %v937_v20  ;;  %v935_v31 = vadd.f32 %v978_v52, %v927_v48  ;;  %v931_v40 = vpop.f32.mrb[7].mxu1 }
 0x325   :  { %942 = vst [vmem:[%s1635_s6 + $0x8] sm:$0xff] %v938_v51  ;;  %v936_v54 = vadd.f32 %v979_v7, %v929_v29 }
 0x326   :  { %v939_v47 = vmax.f32 %v935_v31, 0.0 }
 0x327   :  { %v940_v28 = vmax.f32 %v936_v54, 0.0 }
 0x328   :  { %964 = vst [vmem:[%s1635_s6 + $0x10] sm:$0xff] %v939_v47 }
 0x329   :  { %965 = vst [vmem:[%s1635_s6 + $0x18] sm:$0xff] %v940_v28 }

</bundles_post_ra>
